<compile_context>
chip_gen: v7x
topology: tpu7x:2x2x1
jax: 0.10.0
libtpu: 0.0.40
codegen_flags: <defaults>
</compile_context>

<pallas_src>
import jax
import jax.numpy as jnp
from jax.experimental import pallas as pl
from jax.experimental.pallas import tpu as pltpu


def _loss_kernel(s_ref, cl_ref, ce_ref, out_ref):
    # SMEM scalars: [x, y, ratio] -- hoisted once, kept as scalars.
    x = s_ref[0]
    y = s_ref[1]
    r = s_ref[2]
    one_minus_r = 1.0 - r

    cl = cl_ref[...]
    ce = ce_ref[...]

    both_one = jnp.logical_and(x == 1.0, y == 1.0)

    @pl.when(both_one)
    def _():
        # Exponents still at their init value (1.0): pure VPU fma, no EUP work.
        out_ref[...] = r * cl + one_minus_r * ce

    @pl.when(jnp.logical_not(both_one))
    def _():
        # Generic pow with runtime float exponents: exp(w * log(base)).
        cl_pow = jnp.exp(x * jnp.log(cl))
        ce_pow = jnp.exp(y * jnp.log(ce))
        out_ref[...] = r * cl_pow + one_minus_r * ce_pow


def loss_layer(weights, contrastive_loss, cross_entropy_loss, contrastive_ratio):
    """weights: (1,2) f32; losses: same-shaped f32 arrays; ratio: scalar f32."""
    orig_shape = contrastive_loss.shape
    cl = jnp.asarray(contrastive_loss, jnp.float32).reshape(-1)
    ce = jnp.asarray(cross_entropy_loss, jnp.float32).reshape(-1)
    n = cl.shape[0]

    # Lane-dense slab layout: wide last dim -> unmasked vector stores.
    cols = 1024 if n >= 8 * 1024 else 128
    rows = pl.cdiv(n, cols)
    rows = pl.cdiv(rows, 8) * 8                 # sublane-align
    block_rows = min(512, rows)                 # (512, 1024) f32 = 2 MiB/tile
    rows = pl.cdiv(rows, block_rows) * block_rows
    n_pad = rows * cols

    # Pad with 1.0 (log(1)=0 -> generic path stays NaN-free on padding).
    cl = jnp.pad(cl, (0, n_pad - n), constant_values=1.0).reshape(rows, cols)
    ce = jnp.pad(ce, (0, n_pad - n), constant_values=1.0).reshape(rows, cols)

    # Pack all scalars into one small 1-D SMEM operand: [x, y, ratio].
    scalars = jnp.concatenate([
        jnp.asarray(weights, jnp.float32).reshape(-1),
        jnp.asarray(contrastive_ratio, jnp.float32).reshape(1),
    ])

    grid = (rows // block_rows,)
    tile_spec = pl.BlockSpec((block_rows, cols), lambda i: (i, 0))

    out = pl.pallas_call(
        _loss_kernel,
        out_shape=jax.ShapeDtypeStruct((rows, cols), jnp.float32),
        grid=grid,
        in_specs=[
            pl.BlockSpec(memory_space=pltpu.SMEM),   # scalars [x, y, ratio]
            tile_spec,                               # contrastive_loss tile
            tile_spec,                               # cross_entropy_loss tile
        ],
        out_specs=tile_spec,
        compiler_params=pltpu.CompilerParams(
            dimension_semantics=("parallel",),
        ),
        cost_estimate=pl.CostEstimate(
            flops=3 * n_pad,
            transcendentals=4 * n_pad,
            bytes_accessed=12 * n_pad,
        ),
    )(scalars, cl, ce)

    return out.reshape(-1)[:n].reshape(orig_shape)


def _reference(weights, cl, ce, ratio):
    x, y = weights[0, 0], weights[0, 1]
    return ratio * jnp.power(cl, x) + (1.0 - ratio) * jnp.power(ce, y)


if __name__ == "__main__":
    key = jax.random.PRNGKey(0)
    k1, k2, k3, k4 = jax.random.split(key, 4)

    contrastive_ratio = 0.3

    # --- Case 1: init weights (1.0, 1.0) -> fast path, shape (8, 128) ---
    weights_init = jnp.ones((1, 2), jnp.float32)   # torch.Tensor(1,2).fill_(1.0)
    shape1 = (8, 128)
    cl1 = jax.random.uniform(k1, shape1, jnp.float32, 0.1, 2.0)
    ce1 = jax.random.uniform(k2, shape1, jnp.float32, 0.1, 2.0)

    out1 = jax.block_until_ready(loss_layer(weights_init, cl1, ce1, contrastive_ratio))
    ref1 = _reference(weights_init, cl1, ce1, contrastive_ratio)
    assert jnp.allclose(out1, ref1, rtol=1e-5, atol=1e-5), "mismatch (fast path)"

    # --- Case 2: non-trivial weights -> generic pow path, non-128 last dim ---
    weights_gen = jnp.array([[1.3, 0.7]], jnp.float32)
    shape2 = (4, 100)   # exercises padding / lane-dense slab plumbing
    cl2 = jax.random.uniform(k3, shape2, jnp.float32, 0.1, 2.0)
    ce2 = jax.random.uniform(k4, shape2, jnp.float32, 0.1, 2.0)

    out2 = jax.block_until_ready(loss_layer(weights_gen, cl2, ce2, contrastive_ratio))
    ref2 = _reference(weights_gen, cl2, ce2, contrastive_ratio)
    assert jnp.allclose(out2, ref2, rtol=1e-4, atol=1e-5), "mismatch (generic path)"

    print("KERNEL_OK")
</pallas_src>

<mosaic_0001>
module attributes {stable_mosaic.version = 11 : i64} {
  func.func @_loss_kernel(%arg0: i32, %arg1: memref<3xf32, #tpu.memory_space<smem>>, %arg2: memref<8x128xf32, #tpu.memory_space<vmem>>, %arg3: memref<8x128xf32, #tpu.memory_space<vmem>>, %arg4: memref<8x128xf32, #tpu.memory_space<vmem>>) attributes {dimension_semantics = [#tpu.dimension_semantics<parallel>], iteration_bounds = array<i64: 1>, scalar_prefetch = 0 : i64, scratch_operands = 0 : i64, tpu.core_type = #tpu.core_type<tc>, window_params = [{transform_indices = @transform_0, window_bounds = array<i64: 3>}, {transform_indices = @transform_1, window_bounds = array<i64: 8, 128>}, {transform_indices = @transform_2, window_bounds = array<i64: 8, 128>}, {transform_indices = @transform_3, window_bounds = array<i64: 8, 128>}]} {
    %c0 = arith.constant 0 : index
    %0 = memref.load %arg1[%c0] : memref<3xf32, #tpu.memory_space<smem>>
    %c1 = arith.constant 1 : index
    %1 = memref.load %arg1[%c1] : memref<3xf32, #tpu.memory_space<smem>>
    %c2 = arith.constant 2 : index
    %2 = memref.load %arg1[%c2] : memref<3xf32, #tpu.memory_space<smem>>
    %cst = arith.constant 1.000000e+00 : f32
    %3 = arith.subf %cst, %2 : f32
    %c0_0 = arith.constant 0 : index
    %c0_1 = arith.constant 0 : index
    %4 = vector.load %arg2[%c0_0, %c0_1] : memref<8x128xf32, #tpu.memory_space<vmem>>, vector<8x128xf32>
    %c0_2 = arith.constant 0 : index
    %c0_3 = arith.constant 0 : index
    %5 = vector.load %arg3[%c0_2, %c0_3] : memref<8x128xf32, #tpu.memory_space<vmem>>, vector<8x128xf32>
    %cst_4 = arith.constant 1.000000e+00 : f32
    %6 = arith.cmpf oeq, %0, %cst_4 : f32
    %cst_5 = arith.constant 1.000000e+00 : f32
    %7 = arith.cmpf oeq, %1, %cst_5 : f32
    %8 = arith.andi %6, %7 : i1
    %9 = arith.extui %8 : i1 to i32
    %c0_i32 = arith.constant 0 : i32
    %10 = arith.cmpi ne, %9, %c0_i32 : i32
    scf.if %10 {
      %14 = vector.broadcast %2 : f32 to vector<8x128xf32>
      %15 = arith.mulf %14, %4 : vector<8x128xf32>
      %16 = vector.broadcast %3 : f32 to vector<8x128xf32>
      %17 = arith.mulf %16, %5 : vector<8x128xf32>
      %18 = arith.addf %15, %17 : vector<8x128xf32>
      %c0_7 = arith.constant 0 : index
      %c0_8 = arith.constant 0 : index
      %19 = vector.load %arg4[%c0_7, %c0_8] : memref<8x128xf32, #tpu.memory_space<vmem>>, vector<8x128xf32>
      tpu.vector_store %arg4[%c0_7, %c0_8], %18 {strides = array<i32>} : memref<8x128xf32, #tpu.memory_space<vmem>>, vector<8x128xf32>,
    } else {
    }
    %true = arith.constant true
    %11 = arith.xori %8, %true : i1
    %12 = arith.extui %11 : i1 to i32
    %c0_i32_6 = arith.constant 0 : i32
    %13 = arith.cmpi ne, %12, %c0_i32_6 : i32
    scf.if %13 {
      %14 = math.log %4 : vector<8x128xf32>
      %15 = vector.broadcast %0 : f32 to vector<8x128xf32>
      %16 = arith.mulf %15, %14 : vector<8x128xf32>
      %17 = math.exp %16 : vector<8x128xf32>
      %18 = math.log %5 : vector<8x128xf32>
      %19 = vector.broadcast %1 : f32 to vector<8x128xf32>
      %20 = arith.mulf %19, %18 : vector<8x128xf32>
      %21 = math.exp %20 : vector<8x128xf32>
      %22 = vector.broadcast %2 : f32 to vector<8x128xf32>
      %23 = arith.mulf %22, %17 : vector<8x128xf32>
      %24 = vector.broadcast %3 : f32 to vector<8x128xf32>
      %25 = arith.mulf %24, %21 : vector<8x128xf32>
      %26 = arith.addf %23, %25 : vector<8x128xf32>
      %c0_7 = arith.constant 0 : index
      %c0_8 = arith.constant 0 : index
      %27 = vector.load %arg4[%c0_7, %c0_8] : memref<8x128xf32, #tpu.memory_space<vmem>>, vector<8x128xf32>
      tpu.vector_store %arg4[%c0_7, %c0_8], %26 {strides = array<i32>} : memref<8x128xf32, #tpu.memory_space<vmem>>, vector<8x128xf32>,
    } else {
    }
    return
  }
  func.func @transform_0(%arg0: i32) -> i32 {
    %c0_i32 = arith.constant 0 : i32
    %c0_i32_0 = arith.constant 0 : i32
    return %c0_i32 : i32
  }
  func.func @transform_1(%arg0: i32) -> (i32, i32) {
    %c0_i32 = arith.constant 0 : i32
    %c0_i32_0 = arith.constant 0 : i32
    return %arg0, %c0_i32 : i32, i32
  }
  func.func @transform_2(%arg0: i32) -> (i32, i32) {
    %c0_i32 = arith.constant 0 : i32
    %c0_i32_0 = arith.constant 0 : i32
    return %arg0, %c0_i32 : i32, i32
  }
  func.func @transform_3(%arg0: i32) -> (i32, i32) {
    %c0_i32 = arith.constant 0 : i32
    %c0_i32_0 = arith.constant 0 : i32
    return %arg0, %c0_i32 : i32, i32
  }
}

</mosaic_0001>

<bundles_post_ra>
// kernel: tpu_custom_call.1
= control target key start
LH: loop header
LB: loop body
LE: loop exit
PB: predicated region body
PF: predicated region fallthrough
CT: control target
= control target key end

     0   :  { %8 = vsyncpa [#allocation5], 0  ;;  %s281_s0 = inlined_call_operand.hbm [shape: f32[3], index: 0, kind: input, shape index: {}]   ;;  %s282_s1 = inlined_call_operand.hbm [shape: f32[8,128], index: 1, kind: input, shape index: {}]   ;;  %s283_s2 = inlined_call_operand.hbm [shape: f32[8,128], index: 2, kind: input, shape index: {}]   ;;  %s284_s3 = inlined_call_operand.hbm [shape: f32[8,128], index: 3, kind: output, shape index: {}]  }
   0x1   :  { %9 = vsyncpa [#allocation3], 0 }
   0x2   :  { %10 = vsyncpa [#allocation8], 0 }
   0x3   :  { %11 = vsyncpa [#allocation4], 0  ;;  %s120_s14 = scalar_lea.hbm %s281_s0, 16 }
   0x4   :  { %p121_p0 = scmp.ne.s32.totalorder %s281_s0, %s120_s14  ;;  %p124_p1 = scmp.lt.u32.totalorder %s120_s14, %s281_s0 }
   0x6   :  { %p126_p2 = pnand %p124_p1, %p121_p0 }
   0x8   :  { %129 = shalt.err (!%p126_p2)
}
   0x9   :  { %s204_s19 = smov [#allocation2]   ;;  %s205_s22 = smov [#allocation6]  }
   0xa   :  { %19 = dma.hbm_to_smem %s281_s0, 16, %s204_s19, [#allocation5]  }
   0xb   :  { %s26_s23 = sshll.u32 %s205_s22, 4  ;;  %s206_s24 = smov [#allocation7]   ;;  %s27_s23 = int_to_ptr.vmem [resolvable:$true] %s26_s23 }
   0xc   :  { %s36_s25 = sshll.u32 %s206_s24, 4  ;;  %s130_s28 = scalar_lea.hbm %s282_s1, 128  ;;  %s37_s25 = int_to_ptr.vmem [resolvable:$true] %s36_s25 }
   0xd   :  { %p131_p3 = scmp.ne.s32.totalorder %s282_s1, %s130_s28  ;;  %p134_p4 = scmp.lt.u32.totalorder %s130_s28, %s282_s1 }
   0xf   :  { %p136_p5 = pnand %p134_p4, %p131_p3 }
  0x11   :  { %139 = shalt.err (!%p136_p5)
}
  0x12   :  { %s140_s0 = scalar_lea.vmem %s27_s23, 128  ;;  %p145_p7 = scmp.lt.s32.totalorder %s27_s23, %s27_s23 }
  0x13   :  { %p141_p6 = scmp.ne.s32.totalorder %s27_s23, %s140_s0  ;;  %p146_p8 = scmp.lt.s32.totalorder %s140_s0, %s140_s0 }
  0x15   :  { %p147_p9 = por %p146_p8, %p145_p7 }
  0x17   :  { %p148_p10 = pnand %p147_p9, %p141_p6 }
  0x19   :  { %151 = shalt.err (!%p148_p10)
}
  0x1a   :  { %29 = dma.hbm_to_vmem [thread:$0]  %s282_s1, 128, %s27_s23, [#allocation3]  }
  0x1b   :  { %s152_s10 = scalar_lea.hbm %s283_s2, 128 }
  0x1c   :  { %p153_p11 = scmp.ne.s32.totalorder %s283_s2, %s152_s10  ;;  %p156_p12 = scmp.lt.u32.totalorder %s152_s10, %s283_s2 }
  0x1e   :  { %p158_p13 = pnand %p156_p12, %p153_p11 }
  0x20   :  { %161 = shalt.err (!%p158_p13)
}
  0x21   :  { %s162_s15 = scalar_lea.vmem %s37_s25, 128  ;;  %p167_p1 = scmp.lt.s32.totalorder %s37_s25, %s37_s25 }
  0x22   :  { %p163_p0 = scmp.ne.s32.totalorder %s37_s25, %s162_s15  ;;  %p168_p2 = scmp.lt.s32.totalorder %s162_s15, %s162_s15 }
  0x24   :  { %p169_p3 = por %p168_p2, %p167_p1 }
  0x26   :  { %p170_p4 = pnand %p169_p3, %p163_p0 }
  0x28   :  { %173 = shalt.err (!%p170_p4)
}
  0x29   :  { %39 = dma.hbm_to_vmem [thread:$0]  %s283_s2, 128, %s37_s25, [#allocation8]  }
  0x2a   :  { %196 = dma.done.wait [#allocation5], 16  }
  0x2b   :  { %197 = vsyncadd [#allocation5], 4294967280 }
  0x2c   :  { %198 = dma.done.wait [#allocation3], 128  }
  0x2d   :  { %199 = vsyncadd [#allocation3], 4294967168 }
  0x2e   :  { %200 = dma.done.wait [#allocation8], 128  }
  0x2f   :  { %201 = vsyncadd [#allocation8], 4294967168 }
  0x30   :  { %49 = sfence }
  0x31   :  { %s50_s17 = sld [smem:[#allocation2]]  ;;  %s106_s18 = sld [smem:[#allocation2 + $0x1]]  ;;  %v54_v0 = vld [vmem:[#allocation6] sm:$0xff]  ;;  %v55_v1 = vld [vmem:[#allocation7] sm:$0xff] }
  0x32   :  { %s264_s19 = sld [smem:[#allocation2 + $0x2]] }
  0x37   :  { %p56_p5 = scmp.eq.f32.partialorder %s50_s17, 1.0  ;;  %p57_p6 = scmp.eq.f32.partialorder %s106_s18, 1.0 }
  0x38   :  { %s53_s20 = ssub.f32 1.0, %s264_s19 }
  0x39   :  { %p58_p7 = pnand %p57_p6, %p56_p5 }
  0x3a   :  { %v62_v2 = vstv (!%p58_p7), %s264_s19  ;;  %v64_v3 = vstv (!%p58_p7), %s53_s20 }
  0x3b   :  { %61 = sbr.rel (%p58_p7) target bundleno = 66 (0x42), region = 29  ;;  %v63_v4 = vmul.f32 (!%p58_p7), %v62_v2, %v54_v0  ;;  %v65_v5 = vmul.f32 (!%p58_p7), %v64_v3, %v55_v1 }
  0x3d   :  { %v66_v6 = vadd.f32 (!%p58_p7), %v65_v5, %v63_v4 }
  0x3f   :  { %67 = vst [vmem:[#allocation9] sm:$0xff] (!%p58_p7), %v66_v6 }
  0x42 PF:  { %70 = sbr.rel (!%p58_p7) target bundleno = 100 (0x64), region = 33  ;;  %112 = vlog2.f32 (%p58_p7), %v54_v0  ;;  %v73_v8 = vstv (%p58_p7), %s50_s17  ;;  %v79_v11 = vstv (%p58_p7), %s106_s18  ;;  %v83_v17 = vstv (%p58_p7), %s264_s19 }
  0x43   :  { %114 = vlog2.f32 (%p58_p7), %v55_v1  ;;  %v85_v18 = vstv (%p58_p7), %s53_s20 }
  0x4c   :  { %v113_v7 = vpop.eup %112 }
  0x4d   :  { %v115_v9 = vpop.eup %114  ;;  %v72_v10 = vmul.f32 0.6931472, %v113_v7 }
  0x4e   :  { %v78_v12 = vmul.f32 0.6931472, %v115_v9 }
  0x4f   :  { %v74_v13 = vmul.f32 %v73_v8, %v72_v10 }
  0x50   :  { %v80_v14 = vmul.f32 %v79_v11, %v78_v12 }
  0x51   :  { %v75_v15 = vmul.f32 1.442695, %v74_v13 }
  0x52   :  { %v81_v16 = vmul.f32 1.442695, %v80_v14 }
  0x53   :  { %116 = vpow2.f32 %v75_v15 }
  0x54   :  { %118 = vpow2.f32 %v81_v16 }
  0x5d   :  { %v117_v19 = vpop.eup %116 }
  0x5e   :  { %v119_v20 = vpop.eup %118  ;;  %v84_v21 = vmul.f32 %v117_v19, %v83_v17 }
  0x5f   :  { %v86_v22 = vmul.f32 %v119_v20, %v85_v18 }
  0x61   :  { %v87_v23 = vadd.f32 %v86_v22, %v84_v21 }
  0x63   :  { %88 = vst [vmem:[#allocation9] sm:$0xff] %v87_v23 }
  0x64 PF:  { %s207_s2 = smov [#allocation9]  }
  0x65   :  { %s95_s21 = sshll.u32 %s207_s2, 4  ;;  %s96_s21 = int_to_ptr.vmem [resolvable:$true] %s95_s21 }
  0x66   :  { %s174_s22 = scalar_lea.vmem %s96_s21, 128  ;;  %p179_p9 = scmp.lt.s32.totalorder %s96_s21, %s96_s21 }
  0x67   :  { %p175_p8 = scmp.ne.s32.totalorder %s96_s21, %s174_s22  ;;  %p180_p10 = scmp.lt.s32.totalorder %s174_s22, %s174_s22 }
  0x69   :  { %p181_p11 = por %p180_p10, %p179_p9 }
  0x6b   :  { %p182_p12 = pnand %p181_p11, %p175_p8 }
  0x6d   :  { %185 = shalt.err (!%p182_p12)
}
  0x6e   :  { %s186_s25 = scalar_lea.hbm %s284_s3, 128 }
  0x6f   :  { %p187_p13 = scmp.ne.s32.totalorder %s284_s3, %s186_s25  ;;  %p190_p0 = scmp.lt.u32.totalorder %s186_s25, %s284_s3 }
  0x71   :  { %p192_p1 = pnand %p190_p0, %p187_p13 }
  0x73   :  { %195 = shalt.err (!%p192_p1)
}
  0x74   :  { %98 = dma.vmem_to_hbm [thread:$0]  %s96_s21, 128, %s284_s3, [#allocation4]  }
  0x75   :  { %202 = dma.done.wait [#allocation4], 128  }
  0x76   :  { %203 = vsyncadd [#allocation4], 4294967168 }
  0x77   :  { %102 = vsyncpa [#allocation3], 1 }
  0x78   :  { %103 = vsyncpa [#allocation8], 1 }
  0x79   :  { %104 = vsyncpa [#allocation4], 1 }
  0x7a   :  { %105 = vsyncpa [#allocation5], 1 }

</bundles_post_ra>
